<compile_context>
chip_gen: v7x
topology: tpu7x:2x2x1
jax: 0.10.0
libtpu: 0.0.40
codegen_flags: <defaults>
</compile_context>

<pallas_src>
import functools

import jax
import jax.numpy as jnp
from jax import lax
from jax.experimental import pallas as pl
from jax.experimental.pallas import tpu as pltpu

# ----------------------------- configuration --------------------------------
NUM_NODES = 20                     # global KG node vocabulary (ids 1..20, 0 = padding)
VOCAB = NUM_NODES + 1              # 21
VP = 32                            # vocab rows padded up (bf16 16-row tile friendly)
EMBED = 16                         # start_embed_dim
HIDDEN = 32                        # hidden_dim
OUT_DIM = 4                        # out_dim
OUT_PAD = 128                      # lane-dense padded output width
LAYERS = 2                         # GNN layers
B = 2                              # patients (graphs) in the batch
N_PER = 8                          # nodes per patient graph
N_TOTAL = B * N_PER                # 16 nodes in the PyG-style batched graph
E_PER = 16                         # edges per patient graph
E_TOTAL = B * E_PER                # 32 edges
ROW_LANES = 128                    # lane width of the packed row-index slab

# row offsets of each weight inside the packed bf16 slab (all 16-row aligned)
R_EMB = 0                          # (VP, EMBED)        node_emb.weight (row 0 zero)
R_LIN = 32                         # (EMBED, HIDDEN)    shared self.lin
R_GIN = 48                         # LAYERS x (HIDDEN, HIDDEN)
R_MLP_G = R_GIN + LAYERS * HIDDEN  # (HIDDEN, OUT_PAD)  MLP weight, graph half
R_MLP_N = R_MLP_G + HIDDEN         # (HIDDEN, OUT_PAD)  MLP weight, node half
SLAB_ROWS = R_MLP_N + HIDDEN       # 176


# ------------------------------- kernel -------------------------------------
def graphcare_kernel(cols_ref, rows_ref, ehr_ref, wslab_ref, bias_ref, out_ref,
                     *, n, e, b, vp, emb_dim, h, layers):
    f32 = jnp.float32
    bf16 = jnp.bfloat16

    # ---- weights (bf16, MXU-native), biases f32 (static slab slices) --------
    emb_w = wslab_ref[R_EMB:R_EMB + vp, 0:emb_dim]           # (VP, EMBED)
    w_lin = wslab_ref[R_LIN:R_LIN + emb_dim, 0:h]            # (EMBED, H)
    b_lin = bias_ref[0:1, 0:h]                               # (1, H) f32

    # fused node_emb @ lin weight, computed once and reused by both branches
    emb_lin = jnp.dot(emb_w, w_lin, preferred_element_type=f32).astype(bf16)  # (VP, H)

    # ---- node features: one-hot embedding lookup fused with shared Linear ---
    ids = cols_ref[0:n, :]                                   # (N, 1) int32
    onehot = (lax.broadcasted_iota(jnp.int32, (n, vp), 1) == ids).astype(bf16)
    x = jnp.dot(onehot, emb_lin, preferred_element_type=f32) + b_lin          # (N, H)

    # ---- dense adjacency + self-loop (GIN eps=0): adj_plus = I + A ----------
    esrc = cols_ref[n:n + e, :]                              # (E, 1) int32
    edst = rows_ref[0:1, 0:e]                                # (1, E) int32
    dst_oh = (lax.broadcasted_iota(jnp.int32, (n, e), 0) == edst).astype(bf16)  # (N, E)
    src_oh = (lax.broadcasted_iota(jnp.int32, (e, n), 1) == esrc).astype(bf16)  # (E, N)
    eye = (lax.broadcasted_iota(jnp.int32, (n, n), 0)
           == lax.broadcasted_iota(jnp.int32, (n, n), 1)).astype(f32)
    adj_plus = (jnp.dot(dst_oh, src_oh, preferred_element_type=f32) + eye).astype(bf16)

    # ---- GIN layers: x = relu(W_l((I + A) @ x) + b_l); dropout = identity ---
    for l in range(layers):                                  # static, unrolled
        h_in = jnp.dot(adj_plus, x.astype(bf16), preferred_element_type=f32)  # (N, H)
        w_l = wslab_ref[R_GIN + l * h:R_GIN + (l + 1) * h, 0:h]
        b_l = bias_ref[1 + l:2 + l, 0:h]
        x = jnp.maximum(
            jnp.dot(h_in.astype(bf16), w_l, preferred_element_type=f32) + b_l, 0.0)

    # ---- graph branch: global mean pool per patient --------------------------
    brow = rows_ref[1:2, 0:n]                                # (1, N) int32
    pmask = (lax.broadcasted_iota(jnp.int32, (b, n), 0) == brow)               # (B, N)
    counts = jnp.sum(pmask.astype(f32), axis=1, keepdims=True)                 # (B, 1)
    x_graph = jnp.dot(pmask.astype(bf16), x.astype(bf16),
                      preferred_element_type=f32) / counts                     # (B, H)

    # ---- node branch: EHR multi-hot through fused emb+lin, normalized -------
    ehr = ehr_ref[...]                                       # (B, VP) f32
    esum = jnp.sum(ehr, axis=1, keepdims=True)               # (B, 1)
    x_node = jnp.dot(ehr.astype(bf16), emb_lin, preferred_element_type=f32) / esum
    x_node = x_node + b_lin                                  # (B, H)

    # ---- joint MLP head: weight split -> no lane concat needed ---------------
    w_g = wslab_ref[R_MLP_G:R_MLP_G + h, :]                  # (H, OUT_PAD)
    w_n = wslab_ref[R_MLP_N:R_MLP_N + h, :]                  # (H, OUT_PAD)
    b_mlp = bias_ref[1 + layers:2 + layers, :]               # (1, OUT_PAD)
    out_ref[...] = (jnp.dot(x_graph.astype(bf16), w_g, preferred_element_type=f32)
                    + jnp.dot(x_node.astype(bf16), w_n, preferred_element_type=f32)
                    + b_mlp)                                 # (B, OUT_PAD) lane-dense store


# ------------------------------- wrapper -------------------------------------
def graphcare_forward(cat_node_ids, cat_edge_index, batch, ehr_nodes, params):
    n = cat_node_ids.shape[0]
    e = cat_edge_index.shape[1]
    b = ehr_nodes.shape[0]

    # packed int32 "column" indices: node ids (rows 0..n) + edge src (rows n..n+e)
    cols = jnp.concatenate(
        [cat_node_ids.astype(jnp.int32), cat_edge_index[0].astype(jnp.int32)]
    ).reshape(n + e, 1)
    # packed int32 "row" indices: row 0 = edge dst (lanes 0..e), row 1 = batch (lanes 0..n)
    rows = jnp.zeros((2, ROW_LANES), jnp.int32)
    rows = rows.at[0, :e].set(cat_edge_index[1].astype(jnp.int32))
    rows = rows.at[1, :n].set(batch.astype(jnp.int32))
    ehr_pad = jnp.zeros((b, VP), jnp.float32).at[:, :VOCAB].set(
        ehr_nodes.astype(jnp.float32))

    kern = functools.partial(graphcare_kernel, n=n, e=e, b=b, vp=VP,
                             emb_dim=EMBED, h=HIDDEN, layers=LAYERS)
    vmem = pl.BlockSpec(memory_space=pltpu.MemorySpace.VMEM)
    out = pl.pallas_call(
        kern,
        out_shape=jax.ShapeDtypeStruct((b, OUT_PAD), jnp.float32),
        in_specs=[vmem] * 5,
        out_specs=vmem,
        # TODO(synk): if B / graph sizes grow, add a batch grid axis with
        # dimension_semantics=("parallel",) so both v7x TensorCores are used.
    )(cols, rows, ehr_pad, params['wslab'], params['bias'])
    return out[:, :OUT_DIM]                                  # (B, out_dim) == logits


# --------------- pure-JAX f32 reference (faithful to the PyTorch fwd) --------
def graphcare_reference(cat_node_ids, cat_edge_index, batch, ehr_nodes, params):
    f32 = jnp.float32
    slab = params['wslab'].astype(f32)
    bias = params['bias']
    b = ehr_nodes.shape[0]

    emb_w = slab[R_EMB:R_EMB + VOCAB, 0:EMBED]               # node_emb.weight
    w_lin = slab[R_LIN:R_LIN + EMBED, 0:HIDDEN]
    b_lin = bias[0, 0:HIDDEN]

    x = emb_w[cat_node_ids]                                  # embedding lookup
    x = x @ w_lin + b_lin                                    # self.lin
    src, dst = cat_edge_index[0], cat_edge_index[1]
    for l in range(LAYERS):                                  # GINConv(eps=0) + relu
        agg = jnp.zeros_like(x).at[dst].add(x[src])
        w_l = slab[R_GIN + l * HIDDEN:R_GIN + (l + 1) * HIDDEN, 0:HIDDEN]
        b_l = bias[1 + l, 0:HIDDEN]
        x = jax.nn.relu((x + agg) @ w_l + b_l)

    pmask = (batch[None, :] == jnp.arange(b)[:, None]).astype(f32)
    x_graph = (pmask @ x) / pmask.sum(axis=1, keepdims=True)  # global_mean_pool

    ehr = ehr_nodes.astype(f32)
    x_node = (ehr @ emb_w) / ehr.sum(axis=1, keepdims=True)
    x_node = x_node @ w_lin + b_lin

    w_mlp = jnp.concatenate([slab[R_MLP_G:R_MLP_G + HIDDEN, 0:OUT_DIM],
                             slab[R_MLP_N:R_MLP_N + HIDDEN, 0:OUT_DIM]], axis=0)
    b_mlp = bias[1 + LAYERS, 0:OUT_DIM]
    return jnp.concatenate([x_graph, x_node], axis=1) @ w_mlp + b_mlp


# ------------------------------ parameters -----------------------------------
def glorot(key, shape):
    fan_in, fan_out = shape[-2], shape[-1]
    lim = (6.0 / (fan_in + fan_out)) ** 0.5
    return jax.random.uniform(key, shape, jnp.float32, -lim, lim)


def init_params(key):
    ks = jax.random.split(key, 8)
    emb = 0.1 * jax.random.normal(ks[0], (VOCAB, EMBED), jnp.float32)
    emb = emb.at[0].set(0.0)                                 # padding_idx = 0
    w_lin = glorot(ks[1], (EMBED, HIDDEN))
    b_lin = 0.01 * jax.random.normal(ks[2], (HIDDEN,), jnp.float32)
    w_gin = [glorot(jax.random.fold_in(ks[3], l), (HIDDEN, HIDDEN)) for l in range(LAYERS)]
    b_gin = [0.01 * jax.random.normal(jax.random.fold_in(ks[4], l), (HIDDEN,), jnp.float32)
             for l in range(LAYERS)]
    w_mlp = glorot(ks[5], (2 * HIDDEN, OUT_DIM))
    b_mlp = jnp.zeros((OUT_DIM,), jnp.float32)

    # one packed bf16 weight slab (single DMA) -------------------------------
    slab = jnp.zeros((SLAB_ROWS, OUT_PAD), jnp.bfloat16)
    slab = slab.at[R_EMB:R_EMB + VOCAB, 0:EMBED].set(emb.astype(jnp.bfloat16))
    slab = slab.at[R_LIN:R_LIN + EMBED, 0:HIDDEN].set(w_lin.astype(jnp.bfloat16))
    for l in range(LAYERS):
        slab = slab.at[R_GIN + l * HIDDEN:R_GIN + (l + 1) * HIDDEN, 0:HIDDEN].set(
            w_gin[l].astype(jnp.bfloat16))
    slab = slab.at[R_MLP_G:R_MLP_G + HIDDEN, 0:OUT_DIM].set(w_mlp[:HIDDEN].astype(jnp.bfloat16))
    slab = slab.at[R_MLP_N:R_MLP_N + HIDDEN, 0:OUT_DIM].set(w_mlp[HIDDEN:].astype(jnp.bfloat16))

    # one f32 bias slab (single DMA) ------------------------------------------
    bias = jnp.zeros((LAYERS + 2, OUT_PAD), jnp.float32)
    bias = bias.at[0, 0:HIDDEN].set(b_lin)
    for l in range(LAYERS):
        bias = bias.at[1 + l, 0:HIDDEN].set(b_gin[l])
    bias = bias.at[1 + LAYERS, 0:OUT_DIM].set(b_mlp)
    return {'wslab': slab, 'bias': bias}


# --------------------------------- main ---------------------------------------
if __name__ == "__main__":
    key = jax.random.PRNGKey(0)
    pkey, k_nodes, k_e0, k_e1 = jax.random.split(key, 4)
    params = init_params(pkey)

    # PyG-style batched patient graphs: B graphs of N_PER nodes each
    batch = jnp.repeat(jnp.arange(B, dtype=jnp.int32), N_PER)                 # (N_TOTAL,)
    cat_node_ids = jax.random.randint(k_nodes, (N_TOTAL,), 1, VOCAB, dtype=jnp.int32)
    e0 = jax.random.randint(k_e0, (2, E_PER), 0, N_PER, dtype=jnp.int32)      # patient 0
    e1 = jax.random.randint(k_e1, (2, E_PER), 0, N_PER, dtype=jnp.int32) + N_PER
    cat_edge_index = jnp.concatenate([e0, e1], axis=1)                        # (2, E_TOTAL)
    # per-patient EHR multi-hot over the global node vocabulary
    ehr_nodes = jnp.zeros((B, VOCAB), jnp.float32).at[batch, cat_node_ids].set(1.0)

    fwd = jax.jit(graphcare_forward)
    logits = fwd(cat_node_ids, cat_edge_index, batch, ehr_nodes, params)
    jax.block_until_ready(logits)

    ref = graphcare_reference(cat_node_ids, cat_edge_index, batch, ehr_nodes, params)
    assert logits.shape == (B, OUT_DIM)
    assert bool(jnp.all(jnp.isfinite(logits)))
    assert bool(jnp.allclose(logits, ref, rtol=5e-2, atol=5e-2)), (logits, ref)
    print("KERNEL_OK")
</pallas_src>

<mosaic_0001>
module attributes {stable_mosaic.version = 11 : i64} {
  func.func @graphcare_kernel(%arg0: memref<48x1xi32, #tpu.memory_space<vmem>>, %arg1: memref<2x128xi32, #tpu.memory_space<vmem>>, %arg2: memref<2x32xf32, #tpu.memory_space<vmem>>, %arg3: memref<176x128xbf16, #tpu.memory_space<vmem>>, %arg4: memref<4x128xf32, #tpu.memory_space<vmem>>, %arg5: memref<2x128xf32, #tpu.memory_space<vmem>>) attributes {dimension_semantics = [], scalar_prefetch = 0 : i64, scratch_operands = 0 : i64, tpu.core_type = #tpu.core_type<tc>} {
    %c0 = arith.constant 0 : index
    %c0_0 = arith.constant 0 : index
    %0 = vector.load %arg3[%c0, %c0_0] : memref<176x128xbf16, #tpu.memory_space<vmem>>, vector<32x16xbf16>
    %c32 = arith.constant 32 : index
    %c0_1 = arith.constant 0 : index
    %1 = vector.load %arg3[%c32, %c0_1] : memref<176x128xbf16, #tpu.memory_space<vmem>>, vector<16x32xbf16>
    %c0_2 = arith.constant 0 : index
    %c0_3 = arith.constant 0 : index
    %2 = vector.load %arg4[%c0_2, %c0_3] : memref<4x128xf32, #tpu.memory_space<vmem>>, vector<1x32xf32>
    %cst = arith.constant dense<0.000000e+00> : vector<32x32xf32>
    %3 = tpu.matmul %0, %1, %cst {dimension_numbers = #tpu.dot_dimension_numbers<[1], [0], [0], [1], [0, 0, 1, 1], [], []>} : vector<32x16xbf16>, vector<16x32xbf16>, vector<32x32xf32> -> vector<32x32xf32>
    %4 = arith.truncf %3 : vector<32x32xf32> to vector<32x32xbf16>
    %c0_4 = arith.constant 0 : index
    %c0_5 = arith.constant 0 : index
    %5 = vector.load %arg0[%c0_4, %c0_5] : memref<48x1xi32, #tpu.memory_space<vmem>>, vector<16x1xi32>
    %6 = tpu.iota {dimensions = array<i32: 1>} : vector<16x32xi32>
    %7 = vector.broadcast %5 : vector<16x1xi32> to vector<16x32xi32>
    %8 = arith.cmpi eq, %6, %7 : vector<16x32xi32>
    %9 = arith.extui %8 : vector<16x32xi1> to vector<16x32xi32>
    %10 = arith.sitofp %9 : vector<16x32xi32> to vector<16x32xf32>
    %11 = arith.truncf %10 : vector<16x32xf32> to vector<16x32xbf16>
    %cst_6 = arith.constant dense<0.000000e+00> : vector<16x32xf32>
    %12 = tpu.matmul %11, %4, %cst_6 {dimension_numbers = #tpu.dot_dimension_numbers<[1], [0], [0], [1], [0, 0, 1, 1], [], []>} : vector<16x32xbf16>, vector<32x32xbf16>, vector<16x32xf32> -> vector<16x32xf32>
    %13 = vector.broadcast %2 : vector<1x32xf32> to vector<16x32xf32>
    %14 = arith.addf %12, %13 : vector<16x32xf32>
    %c16 = arith.constant 16 : index
    %c0_7 = arith.constant 0 : index
    %15 = vector.load %arg0[%c16, %c0_7] : memref<48x1xi32, #tpu.memory_space<vmem>>, vector<32x1xi32>
    %c0_8 = arith.constant 0 : index
    %c0_9 = arith.constant 0 : index
    %16 = vector.load %arg1[%c0_8, %c0_9] : memref<2x128xi32, #tpu.memory_space<vmem>>, vector<1x32xi32>
    %17 = tpu.iota {dimensions = array<i32: 0>} : vector<16x32xi32>
    %18 = vector.broadcast %16 : vector<1x32xi32> to vector<16x32xi32>
    %19 = arith.cmpi eq, %17, %18 : vector<16x32xi32>
    %20 = arith.extui %19 : vector<16x32xi1> to vector<16x32xi32>
    %21 = arith.sitofp %20 : vector<16x32xi32> to vector<16x32xf32>
    %22 = arith.truncf %21 : vector<16x32xf32> to vector<16x32xbf16>
    %23 = tpu.iota {dimensions = array<i32: 1>} : vector<32x16xi32>
    %24 = vector.broadcast %15 : vector<32x1xi32> to vector<32x16xi32>
    %25 = arith.cmpi eq, %23, %24 : vector<32x16xi32>
    %26 = arith.extui %25 : vector<32x16xi1> to vector<32x16xi32>
    %27 = arith.sitofp %26 : vector<32x16xi32> to vector<32x16xf32>
    %28 = arith.truncf %27 : vector<32x16xf32> to vector<32x16xbf16>
    %29 = tpu.iota {dimensions = array<i32: 0>} : vector<16x16xi32>
    %30 = tpu.iota {dimensions = array<i32: 1>} : vector<16x16xi32>
    %31 = arith.cmpi eq, %29, %30 : vector<16x16xi32>
    %32 = arith.extui %31 : vector<16x16xi1> to vector<16x16xi32>
    %33 = arith.sitofp %32 : vector<16x16xi32> to vector<16x16xf32>
    %cst_10 = arith.constant dense<0.000000e+00> : vector<16x16xf32>
    %34 = tpu.matmul %22, %28, %cst_10 {dimension_numbers = #tpu.dot_dimension_numbers<[1], [0], [0], [1], [0, 0, 1, 1], [], []>} : vector<16x32xbf16>, vector<32x16xbf16>, vector<16x16xf32> -> vector<16x16xf32>
    %35 = arith.addf %34, %33 : vector<16x16xf32>
    %36 = arith.truncf %35 : vector<16x16xf32> to vector<16x16xbf16>
    %37 = arith.truncf %14 : vector<16x32xf32> to vector<16x32xbf16>
    %cst_11 = arith.constant dense<0.000000e+00> : vector<16x32xf32>
    %38 = tpu.matmul %36, %37, %cst_11 {dimension_numbers = #tpu.dot_dimension_numbers<[1], [0], [0], [1], [0, 0, 1, 1], [], []>} : vector<16x16xbf16>, vector<16x32xbf16>, vector<16x32xf32> -> vector<16x32xf32>
    %c48 = arith.constant 48 : index
    %c0_12 = arith.constant 0 : index
    %39 = vector.load %arg3[%c48, %c0_12] : memref<176x128xbf16, #tpu.memory_space<vmem>>, vector<32x32xbf16>
    %c1 = arith.constant 1 : index
    %c0_13 = arith.constant 0 : index
    %40 = vector.load %arg4[%c1, %c0_13] : memref<4x128xf32, #tpu.memory_space<vmem>>, vector<1x32xf32>
    %41 = arith.truncf %38 : vector<16x32xf32> to vector<16x32xbf16>
    %cst_14 = arith.constant dense<0.000000e+00> : vector<16x32xf32>
    %42 = tpu.matmul %41, %39, %cst_14 {dimension_numbers = #tpu.dot_dimension_numbers<[1], [0], [0], [1], [0, 0, 1, 1], [], []>} : vector<16x32xbf16>, vector<32x32xbf16>, vector<16x32xf32> -> vector<16x32xf32>
    %43 = vector.broadcast %40 : vector<1x32xf32> to vector<16x32xf32>
    %44 = arith.addf %42, %43 : vector<16x32xf32>
    %cst_15 = arith.constant 0.000000e+00 : f32
    %45 = vector.broadcast %cst_15 : f32 to vector<16x32xf32>
    %46 = arith.maximumf %44, %45 : vector<16x32xf32>
    %47 = arith.truncf %46 : vector<16x32xf32> to vector<16x32xbf16>
    %cst_16 = arith.constant dense<0.000000e+00> : vector<16x32xf32>
    %48 = tpu.matmul %36, %47, %cst_16 {dimension_numbers = #tpu.dot_dimension_numbers<[1], [0], [0], [1], [0, 0, 1, 1], [], []>} : vector<16x16xbf16>, vector<16x32xbf16>, vector<16x32xf32> -> vector<16x32xf32>
    %c80 = arith.constant 80 : index
    %c0_17 = arith.constant 0 : index
    %49 = vector.load %arg3[%c80, %c0_17] : memref<176x128xbf16, #tpu.memory_space<vmem>>, vector<32x32xbf16>
    %c2 = arith.constant 2 : index
    %c0_18 = arith.constant 0 : index
    %50 = vector.load %arg4[%c2, %c0_18] : memref<4x128xf32, #tpu.memory_space<vmem>>, vector<1x32xf32>
    %51 = arith.truncf %48 : vector<16x32xf32> to vector<16x32xbf16>
    %cst_19 = arith.constant dense<0.000000e+00> : vector<16x32xf32>
    %52 = tpu.matmul %51, %49, %cst_19 {dimension_numbers = #tpu.dot_dimension_numbers<[1], [0], [0], [1], [0, 0, 1, 1], [], []>} : vector<16x32xbf16>, vector<32x32xbf16>, vector<16x32xf32> -> vector<16x32xf32>
    %53 = vector.broadcast %50 : vector<1x32xf32> to vector<16x32xf32>
    %54 = arith.addf %52, %53 : vector<16x32xf32>
    %cst_20 = arith.constant 0.000000e+00 : f32
    %55 = vector.broadcast %cst_20 : f32 to vector<16x32xf32>
    %56 = arith.maximumf %54, %55 : vector<16x32xf32>
    %c1_21 = arith.constant 1 : index
    %c0_22 = arith.constant 0 : index
    %57 = vector.load %arg1[%c1_21, %c0_22] : memref<2x128xi32, #tpu.memory_space<vmem>>, vector<1x16xi32>
    %58 = tpu.iota {dimensions = array<i32: 0>} : vector<2x16xi32>
    %59 = vector.broadcast %57 : vector<1x16xi32> to vector<2x16xi32>
    %60 = arith.cmpi eq, %58, %59 : vector<2x16xi32>
    %61 = arith.extui %60 : vector<2x16xi1> to vector<2x16xi32>
    %62 = arith.sitofp %61 : vector<2x16xi32> to vector<2x16xf32>
    %cst_23 = arith.constant dense<0.000000e+00> : vector<2xf32>
    %63 = vector.multi_reduction <add>, %62, %cst_23 [1] : vector<2x16xf32> to vector<2xf32>
    %64 = vector.shape_cast %63 : vector<2xf32> to vector<2x1xf32>
    %65 = arith.extui %60 : vector<2x16xi1> to vector<2x16xi32>
    %66 = arith.sitofp %65 : vector<2x16xi32> to vector<2x16xf32>
    %67 = arith.truncf %66 : vector<2x16xf32> to vector<2x16xbf16>
    %68 = arith.truncf %56 : vector<16x32xf32> to vector<16x32xbf16>
    %cst_24 = arith.constant dense<0.000000e+00> : vector<2x32xf32>
    %69 = tpu.matmul %67, %68, %cst_24 {dimension_numbers = #tpu.dot_dimension_numbers<[1], [0], [0], [1], [0, 0, 1, 1], [], []>} : vector<2x16xbf16>, vector<16x32xbf16>, vector<2x32xf32> -> vector<2x32xf32>
    %70 = vector.broadcast %64 : vector<2x1xf32> to vector<2x32xf32>
    %71 = arith.divf %69, %70 : vector<2x32xf32>
    %c0_25 = arith.constant 0 : index
    %c0_26 = arith.constant 0 : index
    %72 = vector.load %arg2[%c0_25, %c0_26] : memref<2x32xf32, #tpu.memory_space<vmem>>, vector<2x32xf32>
    %cst_27 = arith.constant dense<0.000000e+00> : vector<2xf32>
    %73 = vector.multi_reduction <add>, %72, %cst_27 [1] : vector<2x32xf32> to vector<2xf32>
    %74 = vector.shape_cast %73 : vector<2xf32> to vector<2x1xf32>
    %75 = arith.truncf %72 : vector<2x32xf32> to vector<2x32xbf16>
    %cst_28 = arith.constant dense<0.000000e+00> : vector<2x32xf32>
    %76 = tpu.matmul %75, %4, %cst_28 {dimension_numbers = #tpu.dot_dimension_numbers<[1], [0], [0], [1], [0, 0, 1, 1], [], []>} : vector<2x32xbf16>, vector<32x32xbf16>, vector<2x32xf32> -> vector<2x32xf32>
    %77 = vector.broadcast %74 : vector<2x1xf32> to vector<2x32xf32>
    %78 = arith.divf %76, %77 : vector<2x32xf32>
    %79 = vector.broadcast %2 : vector<1x32xf32> to vector<2x32xf32>
    %80 = arith.addf %78, %79 : vector<2x32xf32>
    %c112 = arith.constant 112 : index
    %c0_29 = arith.constant 0 : index
    %81 = vector.load %arg3[%c112, %c0_29] : memref<176x128xbf16, #tpu.memory_space<vmem>>, vector<32x128xbf16>
    %c144 = arith.constant 144 : index
    %c0_30 = arith.constant 0 : index
    %82 = vector.load %arg3[%c144, %c0_30] : memref<176x128xbf16, #tpu.memory_space<vmem>>, vector<32x128xbf16>
    %c3 = arith.constant 3 : index
    %c0_31 = arith.constant 0 : index
    %83 = vector.load %arg4[%c3, %c0_31] : memref<4x128xf32, #tpu.memory_space<vmem>>, vector<1x128xf32>
    %84 = arith.truncf %71 : vector<2x32xf32> to vector<2x32xbf16>
    %cst_32 = arith.constant dense<0.000000e+00> : vector<2x128xf32>
    %85 = tpu.matmul %84, %81, %cst_32 {dimension_numbers = #tpu.dot_dimension_numbers<[1], [0], [0], [1], [0, 0, 1, 1], [], []>} : vector<2x32xbf16>, vector<32x128xbf16>, vector<2x128xf32> -> vector<2x128xf32>
    %86 = arith.truncf %80 : vector<2x32xf32> to vector<2x32xbf16>
    %cst_33 = arith.constant dense<0.000000e+00> : vector<2x128xf32>
    %87 = tpu.matmul %86, %82, %cst_33 {dimension_numbers = #tpu.dot_dimension_numbers<[1], [0], [0], [1], [0, 0, 1, 1], [], []>} : vector<2x32xbf16>, vector<32x128xbf16>, vector<2x128xf32> -> vector<2x128xf32>
    %88 = arith.addf %85, %87 : vector<2x128xf32>
    %89 = vector.broadcast %83 : vector<1x128xf32> to vector<2x128xf32>
    %90 = arith.addf %88, %89 : vector<2x128xf32>
    %c0_34 = arith.constant 0 : index
    %c0_35 = arith.constant 0 : index
    %91 = vector.load %arg5[%c0_34, %c0_35] : memref<2x128xf32, #tpu.memory_space<vmem>>, vector<2x128xf32>
    tpu.vector_store %arg5[%c0_34, %c0_35], %90 {strides = array<i32>} : memref<2x128xf32, #tpu.memory_space<vmem>>, vector<2x128xf32>,
    return
  }
}

</mosaic_0001>

<bundles_post_ra>
// kernel: graphcare_forward.1
= control target key start
LH: loop header
LB: loop body
LE: loop exit
PB: predicated region body
PF: predicated region fallthrough
CT: control target
= control target key end

     0   :  { %vm45_vm0 = vcmask 130048   ;;  %v940_v3 = vmov 0   ;;  %v941_v8 = vmov 0.0   ;;  %s1134_s0 = inlined_call_operand.vmem [shape: s32[48,1], index: 0, kind: input, shape index: {}]   ;;  %s1135_s1 = inlined_call_operand.vmem [shape: s32[2,128], index: 1, kind: input, shape index: {}]   ;;  %s1136_s2 = inlined_call_operand.vmem [shape: f32[2,32], index: 2, kind: input, shape index: {}]   ;;  %s1137_s3 = inlined_call_operand.vmem [shape: bf16[176,128], index: 3, kind: input, shape index: {}]   ;;  %s1138_s4 = inlined_call_operand.vmem [shape: f32[4,128], index: 4, kind: input, shape index: {}]   ;;  %s1139_s5 = inlined_call_operand.hbm [shape: f32[2,128], index: 5, kind: output, shape index: {}]  }
   0x1   :  { %v901_v0 = vld [vmem:[%s1137_s3 + $0x10] sm:$0xff]   ;;  %v902_v1 = vld [vmem:[%s1137_s3] sm:$0xff]   ;;  %v903_v2 = vld [vmem:[%s1137_s3 + $0x8] sm:$0xff]   ;;  %900 = vset.pattern.permute.xlu1 %v940_v3  ;;  %899 = vset.pattern.permute.xlu0 %v940_v3 }
   0x2   :  { %814 = vmatprep.subr.bf16.mxu0 %v901_v0  ;;  %816 = vmatprep.mubr.msk.bf16.mxu0 %vm45_vm0, %v902_v1  ;;  %v169_v4 = vld [vmem:[%s1134_s0 + $0x10] sm:$0xff]  ;;  %v103_v5 = vld [vmem:[%s1134_s0] sm:$0xff]  ;;  %v104_v6 = vld [vmem:[%s1134_s0 + $0x8] sm:$0xff] }
   0x3   :  { %815 = vmatpush3.bf16.msra.mxu0 %v901_v0  ;;  %108 = vperm.xlu1 %900, %v103_v5   ;;  %v170_v7 = vld [vmem:[%s1134_s0 + $0x18] sm:$0xff]  ;;  %v172_v9 = vld [vmem:[%s1134_s0 + $0x28] sm:$0xff]  ;;  %v171_v10 = vld [vmem:[%s1134_s0 + $0x20] sm:$0xff] }
   0x4   :  { %189 = vperm.xlu0 %899, %v169_v4   ;;  %828 = vmatprep.subr.bf16.mxu0 %v941_v8 }
   0x5   :  { %820 = vmatprep.subr.bf16.mxu1 %v941_v8 }
   0x6   :  { %817 = vmatmul.mubr.msk.bf16.vlgmr.msra.gmra.mrb[0].mxu0 %vm45_vm0, %v903_v2 }
   0x7   :  { %111 = vperm.xlu1 %900, %v104_v6  }
   0x8   :  { %192 = vperm.xlu0 %899, %v170_v7  }
   0x9   :  { %10 = vsyncpa [#allocation3], 0  ;;  %vm942_vm1 = vmmov 0   ;;  %v105_v11 = vlaneseq  ;;  %v749_v17 = vld [vmem:[%s1135_s1] ss:$0 sm:$0xff]  ;;  %vm124_vm12 = vcmask 261120  }
   0xa   :  { %824 = vmatprep.mubr.msk.bf16.mxu1 %vm942_vm1, %v941_v8  ;;  %832 = vmatprep.mubr.msk.bf16.mxu0 %vm942_vm1, %v941_v8  ;;  %v943_v23 = vmov 1.0|1.0   ;;  %v904_v35 = vld [vmem:[%s1137_s3 + $0x18] sm:$0xff]   ;;  %v1047_v45 = vld [vmem:[%s1138_s4] ss:$0 sm:$0xff]  ;;  %v906_v59 = vld [vmem:[%s1137_s3 + $0x28] sm:$0xff]  }
   0xb   :  { %198 = vperm.xlu1 %900, %v172_v9   ;;  %v1010_v12 = vshrl.u32 %v105_v11, 7  ;;  %v106_v13 = vand.u32 127, %v105_v11  ;;  %v905_v53 = vld [vmem:[%s1137_s3 + $0x20] sm:$0xff]   ;;  %v907_v6 = vld [vmem:[%s1137_s3 + $0x30] sm:$0xff]   ;;  %s944_s11 = smov [#allocation2]  }
   0xc   :  { %195 = vperm.xlu0 %899, %v171_v10   ;;  %v764_v60 = vld [vmem:[%s1138_s4 + $0x1] ss:$0 sm:$0xff]  ;;  %s732_s12 = sshll.u32 %s944_s11, 4  ;;  %s733_s12 = int_to_ptr.vmem [resolvable:$true] %s732_s12 }
   0xd   :  { %v176_v16 = vadd.s32 8, %v1010_v12  ;;  %vm181_vm5 = vcmp.eq.s32.totalorder %v1010_v12, %v749_v17  ;;  %vm214_vm13 = vcmp.eq.s32.totalorder %v1010_v12, %v106_v13  ;;  %s916_s13 = scalar_lea.vmem %s733_s12, 32  ;;  %p921_p1 = scmp.lt.s32.totalorder %s733_s12, %s733_s12 }
   0xe   :  { %v750_v25 = vsel %vm181_vm5, 1.0, %v941_v8  ;;  %v756_v36 = vsel %vm214_vm13, 1.0, %v941_v8  ;;  %p917_p0 = scmp.ne.s32.totalorder %s733_s12, %s916_s13  ;;  %p922_p2 = scmp.lt.s32.totalorder %s916_s13, %s916_s13 }
   0xf   :  { %vm182_vm6 = vcmp.eq.s32.totalorder %v176_v16, %v749_v17  ;;  %vm215_vm14 = vcmp.eq.s32.totalorder %v176_v16, %v106_v13  ;;  %v773_v16 = vld [vmem:[%s1135_s1 + $0x1] ss:$0 sm:$0xff] }
  0x10   :  { %v751_v26 = vsel %vm182_vm6, 1.0, %v941_v8  ;;  %v757_v38 = vsel %vm215_vm14, 1.0, %v941_v8  ;;  %vm493_vm15 = vcmp.eq.s32.totalorder %v1010_v12, %v773_v16  ;;  %v769_v12 = vld [vmem:[%s1138_s4 + $0x2] ss:$0 sm:$0xff]  ;;  %p923_p3 = por %p922_p2, %p921_p1 }
  0x11   :  { %v187_v28 = vpack.c.bf16 %v751_v26, %v750_v25  ;;  %v774_v17 = vsel %vm493_vm15, 1.0, %v941_v8 }
  0x12   :  { %p924_p4 = pnand %p923_p3, %p917_p0 }
  0x82   :  { %v109_v14 = vpop.permute.xlu1 %108 }
  0x83   :  { %v190_v15 = vpop.permute.xlu0 %189  ;;  %vm113_vm2 = vcmp.eq.s32.totalorder %v106_v13, %v109_v14  ;;  %v547_v14 = vld [vmem:[%s1136_s2] sm:$0x3] }
  0x84   :  { %vm200_vm3 = vcmp.eq.s32.totalorder %v106_v13, %v190_v15  ;;  %v745_v18 = vsel %vm113_vm2, 1.0, %v941_v8  ;;  %v552_v15 = vpack.c.bf16 %v547_v14, %v547_v14  ;;  %vm548_vm2 = vcmask 254976  }
  0x86   :  { %v112_v19 = vpop.permute.xlu1 %111 }
  0x87   :  { %v193_v20 = vpop.permute.xlu0 %192  ;;  %vm114_vm4 = vcmp.eq.s32.totalorder %v106_v13, %v112_v19 }
  0x88   :  { %vm201_vm7 = vcmp.eq.s32.totalorder %v106_v13, %v193_v20  ;;  %v746_v21 = vsel %vm114_vm4, 1.0, %v941_v8  ;;  %v909_v20 = vld [vmem:[%s1137_s3 + $0x38] sm:$0xff]  }
  0x89   :  { %vm758_vm8 = vmpackc.low %vm201_vm7, %vm200_vm3  ;;  %v119_v22 = vpack.c.bf16 %v746_v21, %v745_v18  ;;  %vm496_vm3 = vcmask 123904   ;;  %v549_v18 = vsel %vm548_vm2, %v547_v14, 0.0 }
  0x8a   :  { %829 = vmatpush3.bf16.msk.msra.mxu0 %vm758_vm8, %v943_v23  ;;  %v199_v24 = vpop.permute.xlu1 %198  ;;  %v497_v19 = vsel %vm496_vm3, %v774_v17, 0.0  ;;  %550 = vadd.xlane.f32.xlu0 %v549_v18 }
  0x8b   :  { %v196_v27 = vpop.permute.xlu0 %195  ;;  %vm203_vm9 = vcmp.eq.s32.totalorder %v106_v13, %v199_v24  ;;  %830 = vmatprep.subr.bf16.mxu0 %v941_v8  ;;  %498 = vadd.xlane.f32.xlu1 %v497_v19 }
  0x8c   :  { %vm202_vm10 = vcmp.eq.s32.totalorder %v106_v13, %v196_v27 }
  0x8d   :  { %vm760_vm11 = vmpackc.low %vm203_vm9, %vm202_vm10 }
  0x8e   :  { %831 = vmatpush3.bf16.msk.msra.mxu0 %vm760_vm11, %v943_v23 }
  0x8f   :  { %842 = vmatprep.subr.bf16.mxu0 %v941_v8 }
  0x91   :  { %833 = vmatmul.mubr.msk.bf16.vlgmr.msra.gmra.mrb[4].mxu0 %vm124_vm12, %v187_v28 }
  0x92   :  { %846 = vmatprep.mubr.msk.bf16.mxu0 %vm942_vm1, %v941_v8  ;;  %843 = vmatpush3.bf16.msra.mxu0 %v904_v35 }
  0x93   :  { %844 = vmatprep.subr.bf16.mxu0 %v941_v8 }
  0x96   :  { %845 = vmatpush3.bf16.msra.mxu0 %v905_v53 }
  0x97   :  { %856 = vmatprep.subr.bf16.mxu0 %v941_v8 }
  0xd9   :  { %v818_v29 = vpop.f32.mrb[0].mxu0 }
  0xda   :  { %v86_v30 = vpop.f32.mrb[1].mxu0 }
  0xdb   :  { %v819_v31 = vpop.f32.mrb[2].mxu0 }
  0xdc   :  { %v1026_v32 = vpack.c.bf16 %v819_v31, %v818_v29  ;;  %v89_v33 = vpop.f32.mrb[3].mxu0  ;;  %v908_v31 = vld [vmem:[%s1137_s3 + $0x48] sm:$0xff]  }
  0xdd   :  { %v1028_v34 = vpack.c.bf16 %v89_v33, %v86_v30  ;;  %v500_v30 = vpack.c.bf16 %v774_v17, %v774_v17 }
  0xdf   :  { %821 = vmatpush3.bf16.msra.mxu1 %v1028_v34 }
  0xe0   :  { %822 = vmatprep.subr.bf16.mxu1 %v941_v8 }
  0xe3   :  { %823 = vmatpush3.bf16.msra.mxu1 %v1026_v32 }
  0xe4   :  { %836 = vmatprep.subr.bf16.mxu1 %v941_v8 }
  0xe6   :  { %825 = vmatmul.mubr.msk.bf16.vlgmr.msra.gmra.mrb[0].mxu1 %vm124_vm12, %v119_v22 }
  0xe7   :  { %838 = vmatprep.mubr.msk.bf16.mxu1 %vm942_vm1, %v941_v8 }
 0x164   :  { %v257_v37 = vpop.f32.mrb[4].mxu0 }
 0x165   :  { %v258_v39 = vadd.f32 %v756_v36, %v257_v37  ;;  %v834_v40 = vpop.f32.mrb[5].mxu0 }
 0x166   :  { %v260_v41 = vpop.f32.mrb[6].mxu0 }
 0x167   :  { %v261_v42 = vadd.f32 %v757_v38, %v260_v41  ;;  %v835_v43 = vpop.f32.mrb[7].mxu0  ;;  %v910_v38 = vld [vmem:[%s1137_s3 + $0x50] sm:$0xff]  }
 0x169   :  { %v264_v44 = vpack.c.bf16 %v261_v42, %v258_v39  ;;  %v499_v42 = vpop.xlane.xlu1 %498 }
 0x1b9   :  { %v162_v46 = vpop.f32.mrb[0].mxu1 }
 0x1ba   :  { %v826_v47 = vpop.f32.mrb[1].mxu1  ;;  %v163_v49 = vadd.f32 %v1047_v45, %v162_v46 }
 0x1bb   :  { %v165_v48 = vpop.f32.mrb[2].mxu1 }
 0x1bc   :  { %v166_v50 = vadd.f32 %v1047_v45, %v165_v48  ;;  %v827_v51 = vpop.f32.mrb[3].mxu1 }
 0x1be   :  { %v265_v52 = vpack.c.bf16 %v166_v50, %v163_v49 }
 0x1c0   :  { %837 = vmatpush3.bf16.msra.mxu1 %v265_v52 }
 0x1c1   :  { %850 = vmatprep.subr.bf16.mxu1 %v941_v8 }
 0x1c3   :  { %839 = vmatmul.mubr.msk.bf16.vlgmr.msra.gmra.mrb[4].mxu1 %vm45_vm0, %v264_v44 }
 0x1c4   :  { %852 = vmatprep.mubr.msk.bf16.mxu1 %vm942_vm1, %v941_v8 }
 0x296   :  { %v303_v54 = vpop.f32.mrb[4].mxu1 }
 0x297   :  { %v840_v55 = vpop.f32.mrb[5].mxu1 }
 0x298   :  { %v306_v56 = vpop.f32.mrb[6].mxu1  ;;  %v783_v55 = vld [vmem:[%s1138_s4 + $0x3] ss:$0 sm:$0xff] }
 0x299   :  { %v315_v57 = vpack.c.bf16 %v306_v56, %v303_v54  ;;  %v841_v58 = vpop.f32.mrb[7].mxu1 }
 0x29b   :  { %847 = vmatmul.mubr.msk.bf16.vlgmr.msra.gmra.mrb[8].mxu0 %vm124_vm12, %v315_v57 }
 0x29c   :  { %860 = vmatprep.mubr.msk.bf16.mxu0 %vm942_vm1, %v941_v8  ;;  %857 = vmatpush3.bf16.msra.mxu0 %v906_v59 }
 0x29d   :  { %858 = vmatprep.subr.bf16.mxu0 %v941_v8 }
 0x2a0   :  { %859 = vmatpush3.bf16.msra.mxu0 %v907_v6 }
 0x2a1   :  { %870 = vmatprep.subr.bf16.mxu0 %v941_v8 }
 0x36e   :  { %v369_v61 = vpop.f32.mrb[8].mxu0 }
 0x36f   :  { %v370_v62 = vadd.f32 %v764_v60, %v369_v61  ;;  %v848_v63 = vpop.f32.mrb[9].mxu0 }
 0x370   :  { %v372_v0 = vpop.f32.mrb[10].mxu0 }
 0x371   :  { %v373_v1 = vadd.f32 %v764_v60, %v372_v0  ;;  %v849_v2 = vpop.f32.mrb[11].mxu0  ;;  %v376_v3 = vmax.f32 %v370_v62, 0.0 }
 0x373   :  { %v377_v4 = vmax.f32 %v373_v1, 0.0 }
 0x375   :  { %v378_v5 = vpack.c.bf16 %v377_v4, %v376_v3 }
 0x377   :  { %851 = vmatpush3.bf16.msra.mxu1 %v378_v5 }
 0x378   :  { %864 = vmatprep.subr.bf16.mxu1 %v941_v8 }
 0x37a   :  { %853 = vmatmul.mubr.msk.bf16.vlgmr.msra.gmra.mrb[8].mxu1 %vm45_vm0, %v264_v44 }
 0x37b   :  { %866 = vmatprep.mubr.msk.bf16.mxu1 %vm942_vm1, %v941_v8 }
 0x44d   :  { %v413_v7 = vpop.f32.mrb[8].mxu1 }
 0x44e   :  { %v854_v9 = vpop.f32.mrb[9].mxu1 }
 0x44f   :  { %v416_v10 = vpop.f32.mrb[10].mxu1 }
 0x450   :  { %v425_v11 = vpack.c.bf16 %v416_v10, %v413_v7  ;;  %v855_v13 = vpop.f32.mrb[11].mxu1 }
 0x452   :  { %861 = vmatmul.mubr.msk.bf16.vlgmr.msra.gmra.mrb[12].mxu0 %vm124_vm12, %v425_v11 }
 0x453   :  { %871 = vmatpush3.bf16.msra.mxu0 %v1028_v34  ;;  %874 = vmatprep.mubr.msk.bf16.mxu0 %vm942_vm1, %v941_v8 }
 0x454   :  { %872 = vmatprep.subr.bf16.mxu0 %v941_v8 }
 0x457   :  { %873 = vmatpush3.bf16.msra.mxu0 %v1026_v32  ;;  %v551_v32 = vpop.xlane.xlu0 %550 }
 0x458   :  { %886 = vmatprep.subr.bf16.mxu0 %v941_v8  ;;  %912 = vrcp.f32 %v551_v32 }
 0x459   :  { %914 = vrcp.f32 %v499_v42 }
 0x45a   :  { %875 = vmatmul.mubr.msk.bf16.vlgmr.msra.gmra.mrb[16].mxu0 %vm124_vm12, %v552_v15 }
 0x45b   :  { %890 = vmatprep.mubr.msk.bf16.mxu0 %vm942_vm1, %v941_v8  ;;  %887 = vmatpush3.bf16.msra.mxu0 %v909_v20 }
 0x45c   :  { %888 = vmatprep.subr.bf16.mxu0 %v941_v8 }
 0x462   :  { %v913_v33 = vpop.eup %912 }
 0x463   :  { %v915_v43 = vpop.eup %914 }
 0x525   :  { %v479_v21 = vpop.f32.mrb[12].mxu0 }
 0x526   :  { %v480_v22 = vadd.f32 %v769_v12, %v479_v21  ;;  %v862_v23 = vpop.f32.mrb[13].mxu0 }
 0x527   :  { %v482_v24 = vpop.f32.mrb[14].mxu0 }
 0x528   :  { %v483_v25 = vadd.f32 %v769_v12, %v482_v24  ;;  %v863_v26 = vpop.f32.mrb[15].mxu0  ;;  %v486_v27 = vmax.f32 %v480_v22, 0.0 }
 0x52a   :  { %v487_v28 = vmax.f32 %v483_v25, 0.0 }
 0x52c   :  { %v501_v29 = vpack.c.bf16 %v487_v28, %v486_v27 }
 0x52d   :  { %v590_v34 = vpop.f32.mrb[16].mxu0 }
 0x52e   :  { %865 = vmatpush3.bf16.msra.mxu1 %v501_v29  ;;  %v597_v35 = vmul.f32 %v913_v33, %v590_v34  ;;  %v876_v36 = vpop.f32.mrb[17].mxu0 }
 0x52f   :  { %878 = vmatprep.subr.bf16.mxu1 %v941_v8  ;;  %v593_v37 = vpop.f32.mrb[18].mxu0 }
 0x530   :  { %v598_v39 = vadd.f32 %v1047_v45, %v597_v35  ;;  %v877_v40 = vpop.f32.mrb[19].mxu0 }
 0x531   :  { %867 = vmatmul.mubr.msk.bf16.vlgmr.msra.gmra.mrb[12].mxu1 %vm45_vm0, %v500_v30 }
 0x532   :  { %879 = vmatpush3.bf16.msra.mxu1 %v908_v31  ;;  %882 = vmatprep.mubr.msk.bf16.mxu1 %vm942_vm1, %v941_v8  ;;  %v609_v41 = vpack.c.bf16 %v598_v39, %v598_v39 }
 0x533   :  { %880 = vmatprep.subr.bf16.mxu1 %v941_v8  ;;  %v911_v8 = vld [vmem:[%s1137_s3 + $0x40] sm:$0xff]  }
 0x534   :  { %889 = vmatpush3.bf16.msra.mxu0 %v911_v8 }
 0x536   :  { %881 = vmatpush3.bf16.msra.mxu1 %v910_v38 }
 0x539   :  { %883 = vmatmul.mubr.msk.bf16.vlgmr.msra.gmra.mrb[16].mxu1 %vm124_vm12, %v609_v41 }
 0x604   :  { %v539_v44 = vpop.f32.mrb[12].mxu1 }
 0x605   :  { %v546_v46 = vmul.f32 %v915_v43, %v539_v44  ;;  %v868_v47 = vpop.f32.mrb[13].mxu1 }
 0x606   :  { %v542_v48 = vpop.f32.mrb[14].mxu1 }
 0x607   :  { %v608_v49 = vpack.c.bf16 %v546_v46, %v546_v46  ;;  %v869_v50 = vpop.f32.mrb[15].mxu1 }
 0x609   :  { %891 = vmatmul.mubr.msk.bf16.vlgmr.msra.gmra.mrb[20].mxu0 %vm124_vm12, %v608_v49 }
 0x60c   :  { %v659_v45 = vpop.f32.mrb[16].mxu1 }
 0x60d   :  { %v884_v51 = vpop.f32.mrb[17].mxu1 }
 0x60e   :  { %v662_v52 = vpop.f32.mrb[18].mxu1 }
 0x60f   :  { %v885_v53 = vpop.f32.mrb[19].mxu1 }
 0x6dc   :  { %v714_v54 = vpop.f32.mrb[20].mxu0 }
 0x6dd   :  { %v715_v56 = vadd.f32 %v714_v54, %v659_v45  ;;  %v892_v57 = vpop.f32.mrb[21].mxu0 }
 0x6de   :  { %v717_v58 = vpop.f32.mrb[22].mxu0 }
 0x6df   :  { %v893_v59 = vpop.f32.mrb[23].mxu0  ;;  %v724_v60 = vadd.f32 %v783_v55, %v715_v56 }
 0x6e1   :  { %725 = vst [vmem:[#allocation2] sm:$0x3] %v724_v60 }
 0x6e2   :  { %927 = shalt.err (!%p924_p4)
}
 0x6e3   :  { %s928_s4 = scalar_lea.hbm %s1139_s5, 32 }
 0x6e4   :  { %p929_p5 = scmp.ne.s32.totalorder %s1139_s5, %s928_s4  ;;  %p932_p6 = scmp.lt.u32.totalorder %s928_s4, %s1139_s5 }
 0x6e6   :  { %p934_p7 = pnand %p932_p6, %p929_p5 }
 0x6e8   :  { %937 = shalt.err (!%p934_p7)
}
 0x6e9   :  { %735 = dma.vmem_to_hbm [thread:$0]  %s733_s12, 32, %s1139_s5, [#allocation3]  }
 0x6ea   :  { %938 = dma.done.wait [#allocation3], 32  }
 0x6eb   :  { %939 = vsyncadd [#allocation3], 4294967264 }
 0x6ec   :  { %739 = vsyncpa [#allocation3], 1 }

</bundles_post_ra>
